<compile_context>
chip_gen: v6e
topology: v6e:2x2x1
jax: 0.10.0
libtpu: 0.0.40
codegen_flags: <defaults>
</compile_context>

<pallas_src>
import math
from functools import partial

import jax
import jax.numpy as jnp
import numpy as np
from jax import lax
from jax.experimental import pallas as pl
from jax.experimental.pallas import tpu as pltpu

_LANE = 128
_SUBLANE = 8
_TILE_ROWS = 4096          # (4096, 128) f32 block = 2 MiB
_NUM_SPLITS = 2            # leading "parallel" grid axis (both v7x TensorCores)


def _sum_log_kernel(x_ref, o_ref, *, rows_total, tile_rows, blocks_per_split):
    c = pl.program_id(0)   # core / split index      ("parallel")
    i = pl.program_id(1)   # reduction step in split ("arbitrary")

    @pl.when(i == 0)
    def _():
        o_ref[...] = jnp.zeros_like(o_ref)

    # Logical block index.  It may exceed the real block count for the tail
    # split; the input index_map clamps the DMA, and the row mask below
    # zeroes any contribution from clamped / overhanging rows.
    block_idx = c * blocks_per_split + i
    row0 = block_idx * tile_rows
    row_ids = row0 + lax.broadcasted_iota(jnp.int32, x_ref.shape, 0)
    valid = row_ids < rows_total

    x = jnp.where(valid, x_ref[...].astype(jnp.float32), 1.0)   # log(1) == 0
    logs = jnp.log(x)                                           # EUP
    # VPU-only partial reduce: fold groups of 8 rows onto the vreg-shaped
    # (8, 128) accumulator that lives in the resident output block.
    o_ref[...] += jnp.sum(
        logs.reshape(tile_rows // _SUBLANE, _SUBLANE, _LANE), axis=0)


def _sum_log(x: jax.Array) -> jax.Array:
    """sum(log(x)) over all elements of x, computed on TPU via Pallas."""
    flat = x.reshape(-1)
    n = flat.shape[0]
    if n == 0:
        return jnp.float32(0.0)

    chunk = _SUBLANE * _LANE
    if n % chunk != 0:
        # TODO(synk): rare ragged fallback; pads with 1.0 (log == 0) and costs
        # one extra HBM round trip for this tensor only.
        pad = chunk - n % chunk
        flat = jnp.concatenate([flat, jnp.ones((pad,), flat.dtype)])
    mat = flat.reshape(-1, _LANE)       # free reshape when no pad was needed
    rows = mat.shape[0]                 # multiple of 8

    tile_rows = min(_TILE_ROWS, rows)   # both multiples of 8, tile <= rows
    n_blocks = pl.cdiv(rows, tile_rows)
    blocks_per_split = pl.cdiv(n_blocks, _NUM_SPLITS)

    def x_index_map(c, i):
        b = c * blocks_per_split + i
        # Clamp fully out-of-range tail blocks onto the last real block; their
        # contribution is masked to zero inside the kernel.
        return (jnp.minimum(b, n_blocks - 1), 0)

    out = pl.pallas_call(
        partial(_sum_log_kernel, rows_total=rows, tile_rows=tile_rows,
                blocks_per_split=blocks_per_split),
        out_shape=jax.ShapeDtypeStruct((_NUM_SPLITS * _SUBLANE, _LANE),
                                       jnp.float32),
        grid=(_NUM_SPLITS, blocks_per_split),
        in_specs=[pl.BlockSpec((tile_rows, _LANE), x_index_map)],
        out_specs=pl.BlockSpec((_SUBLANE, _LANE), lambda c, i: (c, 0)),
        compiler_params=pltpu.CompilerParams(
            dimension_semantics=("parallel", "arbitrary")),
    )(mat)
    # Tiny final cross-lane reduce (2 * 8 * 128 partials) left to XLA.
    return jnp.sum(out)


def rate_loss(model_output: dict, gt_image: jax.Array):
    """Forward pass of RateLoss.

    bpp = sum_k sum(log(v_k)) / (-log(2) * N*H*W) over keys ending in
    '_likelihoods'.  Returns (bpp, {'loss_bpp': bpp}).
    """
    num_pixels = gt_image.shape[0] * gt_image.shape[2] * gt_image.shape[3]
    bpp = jnp.float32(0.0)
    for k, v in model_output.items():
        if k.endswith('_likelihoods'):
            bpp = bpp + _sum_log(v) / (-math.log(2) * num_pixels)
    return bpp, {'loss_bpp': bpp}


if __name__ == "__main__":
    key = jax.random.PRNGKey(0)
    k1, k2 = jax.random.split(key)

    # Small shapes consistent with a compression model:
    #   gt_image: (N, C, H, W) NCHW image
    #   y/z likelihoods: per-latent-element likelihoods in (0, 1]
    gt_image = jax.random.uniform(key, (2, 3, 16, 16), dtype=jnp.float32)
    model_output = {
        "y_likelihoods": jax.random.uniform(
            k1, (2, 4, 8, 8), minval=0.05, maxval=1.0, dtype=jnp.float32),
        "z_likelihoods": jax.random.uniform(
            k2, (2, 4, 4, 4), minval=0.05, maxval=1.0, dtype=jnp.float32),
        "x_hat": jax.random.uniform(key, (2, 3, 16, 16), dtype=jnp.float32),
    }

    bpp, aux = rate_loss(model_output, gt_image)
    bpp = jax.block_until_ready(bpp)

    # Reference check (plain JAX, same math as the PyTorch module).
    num_pixels = gt_image.shape[0] * gt_image.shape[2] * gt_image.shape[3]
    ref = 0.0
    for k, v in model_output.items():
        if k.endswith('_likelihoods'):
            ref = ref + jnp.sum(jnp.log(v)) / (-math.log(2) * num_pixels)
    assert np.allclose(np.asarray(bpp), np.asarray(ref), rtol=1e-5, atol=1e-5)
    assert np.allclose(np.asarray(aux['loss_bpp']), np.asarray(ref),
                       rtol=1e-5, atol=1e-5)

    print("KERNEL_OK")
</pallas_src>

<mosaic_0001>
module attributes {stable_mosaic.version = 11 : i64} {
  func.func @_sum_log_kernel(%arg0: i32, %arg1: i32, %arg2: memref<8x128xf32, #tpu.memory_space<vmem>>, %arg3: memref<8x128xf32, #tpu.memory_space<vmem>>) attributes {dimension_semantics = [#tpu.dimension_semantics<parallel>, #tpu.dimension_semantics<arbitrary>], iteration_bounds = array<i64: 2, 1>, scalar_prefetch = 0 : i64, scratch_operands = 0 : i64, tpu.core_type = #tpu.core_type<tc>, window_params = [{transform_indices = @transform_0, window_bounds = array<i64: 8, 128>}, {transform_indices = @transform_1, window_bounds = array<i64: 8, 128>}]} {
    %c0_i32 = arith.constant 0 : i32
    %0 = arith.cmpi eq, %arg1, %c0_i32 : i32
    %1 = arith.extui %0 : i1 to i32
    %c0_i32_0 = arith.constant 0 : i32
    %2 = arith.cmpi ne, %1, %c0_i32_0 : i32
    scf.if %2 {
      %cst_8 = arith.constant 0.000000e+00 : f32
      %20 = vector.broadcast %cst_8 : f32 to vector<8x128xf32>
      %c0_9 = arith.constant 0 : index
      %c0_10 = arith.constant 0 : index
      %21 = vector.load %arg3[%c0_9, %c0_10] : memref<8x128xf32, #tpu.memory_space<vmem>>, vector<8x128xf32>
      tpu.vector_store %arg3[%c0_9, %c0_10], %20 {strides = array<i32>} : memref<8x128xf32, #tpu.memory_space<vmem>>, vector<8x128xf32>,
    } else {
    }
    %c1_i32 = arith.constant 1 : i32
    %3 = arith.muli %arg0, %c1_i32 : i32
    %4 = arith.addi %3, %arg1 : i32
    %c8_i32 = arith.constant 8 : i32
    %5 = arith.muli %4, %c8_i32 : i32
    %6 = tpu.iota {dimensions = array<i32: 0>} : vector<8x128xi32>
    %7 = vector.broadcast %5 : i32 to vector<8x128xi32>
    %8 = arith.addi %7, %6 : vector<8x128xi32>
    %c8_i32_1 = arith.constant 8 : i32
    %9 = vector.broadcast %c8_i32_1 : i32 to vector<8x128xi32>
    %10 = arith.cmpi slt, %8, %9 : vector<8x128xi32>
    %c0 = arith.constant 0 : index
    %c0_2 = arith.constant 0 : index
    %11 = vector.load %arg2[%c0, %c0_2] : memref<8x128xf32, #tpu.memory_space<vmem>>, vector<8x128xf32>
    %cst = arith.constant 1.000000e+00 : f32
    %12 = vector.broadcast %cst : f32 to vector<8x128xf32>
    %13 = arith.select %10, %11, %12 : vector<8x128xi1>, vector<8x128xf32>
    %14 = math.log %13 : vector<8x128xf32>
    %c0_3 = arith.constant 0 : index
    %c0_4 = arith.constant 0 : index
    %15 = vector.load %arg3[%c0_3, %c0_4] : memref<8x128xf32, #tpu.memory_space<vmem>>, vector<8x128xf32>
    %16 = vector.shape_cast %14 : vector<8x128xf32> to vector<1x8x128xf32>
    %cst_5 = arith.constant dense<0.000000e+00> : vector<8x128xf32>
    %17 = vector.multi_reduction <add>, %16, %cst_5 [0] : vector<1x8x128xf32> to vector<8x128xf32>
    %18 = arith.addf %15, %17 : vector<8x128xf32>
    %c0_6 = arith.constant 0 : index
    %c0_7 = arith.constant 0 : index
    %19 = vector.load %arg3[%c0_6, %c0_7] : memref<8x128xf32, #tpu.memory_space<vmem>>, vector<8x128xf32>
    tpu.vector_store %arg3[%c0_6, %c0_7], %18 {strides = array<i32>} : memref<8x128xf32, #tpu.memory_space<vmem>>, vector<8x128xf32>,
    return
  }
  func.func @transform_0(%arg0: i32, %arg1: i32) -> (i32, i32) {
    %c1_i32 = arith.constant 1 : i32
    %0 = arith.muli %arg0, %c1_i32 : i32
    %1 = arith.addi %0, %arg1 : i32
    %c0_i32 = arith.constant 0 : i32
    %2 = arith.minsi %1, %c0_i32 : i32
    %c0_i32_0 = arith.constant 0 : i32
    %c0_i32_1 = arith.constant 0 : i32
    return %2, %c0_i32_0 : i32, i32
  }
  func.func @transform_1(%arg0: i32, %arg1: i32) -> (i32, i32) {
    %c0_i32 = arith.constant 0 : i32
    %c0_i32_0 = arith.constant 0 : i32
    return %arg0, %c0_i32 : i32, i32
  }
}

</mosaic_0001>

<bundles_post_ra>
// kernel: tpu_custom_call.1
= control target key start
LH: loop header
LB: loop body
LE: loop exit
PB: predicated region body
PF: predicated region fallthrough
CT: control target
= control target key end

     0   :  { %6 = vsyncpa [#allocation3], 0  ;;  %s664_s0 = inlined_call_operand.hbm [shape: f32[8,128], index: 0, kind: input, shape index: {}]   ;;  %s665_s1 = inlined_call_operand.hbm [shape: f32[16,128], index: 1, kind: output, shape index: {}]  }
   0x1   :  { %8 = vsyncpa [#allocation3 + $0x1], 0 }
   0x2   :  { %9 = vsyncpa [#allocation4], 0 }
   0x3   :  { %11 = vsyncpa [#allocation4 + $0x1], 0  ;;  %s514_s6 = smov 0   ;;  %s516_s7 = smov 0  }
   0x4   :  { %s518_s8 = smov 0   ;;  %s520_s9 = smov 0  }
   0x5   :  { %s522_s10 = smov 0   ;;  %s524_s11 = smov 0  }
   0x6   :  { %s526_s12 = smov 0   ;;  %s528_s13 = smov 0  }
   0x7 LB: > { %s268_s14 = sadd.s32 4294967295, %s500_s13   ;;  %s269_s15 = sadd.s32 4294967294, %s500_s13   ;;  %s500_s13 = sphi %s528_s13, %s17_s13   ;;  %s496_s12 = sphi %s526_s12, %s684_s12   ;;  %s492_s11 = sphi %s524_s11, %s683_s11   ;;  %s488_s10 = sphi %s522_s10, %s654_s10   ;;  %s484_s9 = sphi %s520_s9, %s682_s9   ;;  %s480_s8 = sphi %s518_s8, %s681_s8   ;;  %s476_s7 = sphi %s516_s7, %s680_s7   ;;  %s472_s6 = sphi %s514_s6, %s679_s6  }
   0x8   : > { %s29_s16 = sadd.s32 1, %s496_s12  ;;  %p469_p1 = scmp.ne.s32.totalorder %s488_s10, 0 }
   0x9   : > { %p31_p0 = scmp.ge.s32.totalorder %s29_s16, 2  ;;  %p50_p2 = scmp.eq.s32.totalorder %s500_s13, 0 }
   0xa   : > { %p55_p3 = scmp.ne.s32.totalorder %s488_s10, %s484_s9  ;;  %p56_p5 = scmp.eq.s32.totalorder %s268_s14, 0 }
   0xb   : > { %s686_s16 = smov (%p31_p0, %s29_s16), 0  ;;  %p560_p4 = por %p469_p1, %p50_p2 }
   0xc   : > { %p564_p6 = por %p56_p5, %p55_p3  ;;  %s65_s19 = ssub.s32 %s496_s12, %s686_s16 }
   0xd   : > { %p66_p7 = scmp.eq.s32.totalorder %s65_s19, 0  ;;  %s68_s20 = sadd.s32 1, %s480_s8 }
   0xe   : > { %s669_s18 = scalar_select %p564_p6, 1, 0 }
   0xf   : > { %s572_s21 = scalar_select %p66_p7, %s480_s8, %s68_s20  }
  0x10   : > { %p78_p8 = scmp.ne.s32.totalorder %s480_s8, %s476_s7  ;;  %p79_p9 = scmp.eq.s32.totalorder %s268_s14, 1 }
  0x11   : > { %p84_p10 = scmp.ne.s32.totalorder %s476_s7, %s472_s6  ;;  %p85_p11 = scmp.eq.s32.totalorder %s269_s15, 1 }
  0x12   : > { %p578_p12 = por %p79_p9, %p78_p8  ;;  %p294_p1 = scmp.lt.s32.totalorder %s500_s13, 2 }
  0x13   : > { %p583_p0 = por %p85_p11, %p84_p10  ;;  %s502_s24 = smov [#allocation2]  }
  0x14   : > { %s670_s22 = scalar_select %p578_p12, 1, 0 }
  0x15   : > { %s671_s23 = scalar_select %p583_p0, 1, 0 }
  0x16   : > { %s119_s25 = sshll.u32 %s502_s24, 4  ;;  %p590_p2 = pnand %p294_p1, %p560_p4  ;;  %s120_s25 = int_to_ptr.vmem [resolvable:$true] %s119_s25 }
  0x17   : > { %s371_s29 = scalar_lea.hbm %s664_s0, 128 }
  0x18   : > { %p372_p7 = scmp.ne.s32.totalorder %s664_s0, %s371_s29  ;;  %p373_p8 = pneg %p590_p2 }
  0x19   : > { %p378_p4 = scmp.lt.s32.totalorder %s371_s29, %s371_s29 }
  0x1a   : > { %p374_p9 = pnand %p373_p8, %p372_p7 }
  0x1c   : > { %p375_p10 = pneg %p374_p9 }
  0x1e   : > { %p380_p11 = pnand %p378_p4, %p375_p10 }
  0x20   : > { %383 = shalt.err (!%p380_p11)
}
  0x21   : > { %s384_s3 = scalar_lea.vmem %s120_s25, 128  ;;  %s391_s4 = scalar_lea.vmem %s120_s25, 256 }
  0x22   : > { %p385_p1 = scmp.ne.s32.totalorder %s120_s25, %s384_s3  ;;  %p392_p5 = scmp.lt.s32.totalorder %s120_s25, %s120_s25 }
  0x23   : > { %p393_p0 = scmp.lt.s32.totalorder %s391_s4, %s384_s3 }
  0x24   : > { %p387_p13 = pnand %p385_p1, %p373_p8 }
  0x25   : > { %p394_p12 = por %p393_p0, %p392_p5 }
  0x26   : > { %p388_p3 = pneg %p387_p13 }
  0x28   : > { %p395_p6 = pnand %p394_p12, %p388_p3 }
  0x2a   : > { %398 = shalt.err (!%p395_p6)
}
  0x2b   : > { %289 = dma.hbm_to_vmem [thread:$0]  (!%p590_p2), %s664_s0, 128, %s120_s25, [#allocation3]  }
  0x2c   : > { %p673_p7 = scmp.lt.s32.totalorder %s500_s13, 3  ;;  %p674_p9 = scmp.ge.s32.totalorder %s500_s13, 1 }
  0x2e   : > { %p125_p10 = pnand %p674_p9, %p673_p7 }
  0x2f   : > { %s130_s14 = sand.u32 (!%p125_p10), 1, %s488_s10   ;;  %p675_p12 = scmp.ne.s32.totalorder (!%p125_p10), %s669_s18, 0 }
  0x30   : > { %128 = sbr.rel (%p125_p10) target bundleno = 91 (0x5b), region = 24  ;;  %s275_s15 = sshll.u32 (!%p125_p10), %s130_s14, 3 }
  0x31   : > { %s131_s17 = scalar_lea.sflag (!%p125_p10), [#allocation3], %s130_s14  ;;  %s134_s19 = scalar_lea.vmem (!%p125_p10), [#allocation2], %s275_s15 }
  0x35   : > { %462 = dma.done.wait (%p675_p12), %s131_s17, 128  }
  0x36   : > { %464 = vsyncadd (%p675_p12), %s131_s17, 4294967168  ;;  %s277_s20 = sshll.u32 %s492_s11, 3  ;;  %v163_v0 = vlaneseq  ;;  %v168_v4 = vld [vmem:[%s134_s19] sm:$0xff]  ;;  %s150_s24 = sand.u32 1, %s476_s7  }
  0x37   : > { %v165_v1 = vstv %s277_s20  ;;  %s276_s25 = sshll.u32 %s150_s24, 3  ;;  %s279_s26 = sshll.u32 %s492_s11, 7 }
  0x38   : > { %v164_v2 = vshrl.u32 %v163_v0, 7  ;;  %s152_s27 = scalar_lea.vmem [#allocation5], %s276_s25  ;;  %s188_s30 = scalar_lea.hbm %s665_s1, %s279_s26 }
  0x39   : > { %s190_s18 = sshll.u32 %s152_s27, 4  ;;  %s177_s2 = scalar_lea.sflag [#allocation4], %s150_s24  ;;  %s191_s18 = int_to_ptr.vmem [resolvable:$true] %s190_s18 }
  0x3a   : > { %v166_v3 = vadd.s32 %v165_v1, %v164_v2  ;;  %s399_s3 = scalar_lea.vmem %s191_s18, 128  ;;  %p676_p13 = scmp.ne.s32.totalorder %s670_s22, 0 }
  0x3b   : > { %p400_p6 = scmp.ne.s32.totalorder %s191_s18, %s399_s3  ;;  %s503_s4 = smov [#allocation5]  }
  0x3c   : > { %vm167_vm0 = vcmp.lt.s32.totalorder %v166_v3, 8  ;;  %s403_s5 = sshll.u32 %s503_s4, 4  ;;  %s404_s5 = int_to_ptr.vmem [resolvable:$false] %s403_s5 }
  0x3d   : > { %v169_v5 = vsel %vm167_vm0, %v168_v4, 1.0  ;;  %p401_p0 = pnand %p400_p6, %p676_p13  ;;  %s405_s9 = scalar_lea.vmem %s404_s5, 256 }
  0x3e   : > { %369 = vlog2.f32 %v169_v5  ;;  %p406_p3 = scmp.lt.s32.totalorder %s191_s18, %s404_s5  ;;  %p407_p5 = scmp.lt.s32.totalorder %s405_s9, %s399_s3 }
  0x3f   : > { %p402_p2 = pneg %p401_p0 }
  0x40   : > { %p408_p8 = por %p407_p5, %p406_p3 }
  0x42   : > { %p409_p4 = pnand %p408_p8, %p402_p2 }
  0x4b   : > { %v370_v6 = vpop.eup %369 }
  0x4c   : > { %v171_v7 = vmul.f32 0.6931472, %v370_v6 }
  0x4e   : > { %175 = vst [vmem:[%s152_s27] sm:$0xff] %v171_v7 }
  0x4f   : > { %412 = shalt.err (!%p409_p4)
}
  0x50   : > { %s413_s11 = scalar_lea.hbm %s188_s30, 128  ;;  %s417_s17 = scalar_lea.hbm %s665_s1, 256 }
  0x51   : > { %p414_p11 = scmp.ne.s32.totalorder %s188_s30, %s413_s11  ;;  %p418_p9 = scmp.lt.s32.totalorder %s188_s30, %s665_s1 }
  0x52   : > { %p419_p10 = scmp.lt.s32.totalorder %s417_s17, %s413_s11 }
  0x53   : > { %p415_p1 = pnand %p414_p11, %p676_p13 }
  0x54   : > { %p420_p12 = por %p419_p10, %p418_p9 }
  0x55   : > { %p416_p7 = pneg %p415_p1 }
  0x57   : > { %p421_p6 = pnand %p420_p12, %p416_p7 }
  0x59   : > { %424 = shalt.err (!%p421_p6)
}
  0x5a   : > { %284 = dma.vmem_to_hbm [thread:$0]  (%p676_p13), %s191_s18, 128, %s188_s30, %s177_s2  }
  0x5b PF: > { %s202_s24 = sand.u32 1, %s472_s6   ;;  %p677_p0 = scmp.ne.s32.totalorder %s671_s23, 0 }
  0x5c   : > { %p678_p2 = scmp.ge.s32.totalorder %s500_s13, 2  ;;  %s203_s25 = scalar_lea.sflag [#allocation4], %s202_s24 }
  0x5e   : > { %p291_p3 = pnand %p678_p2, %p677_p0 }
  0x60   : > { %p292_p5 = pneg %p291_p3 }
  0x62   : > { %466 = dma.done.wait (%p292_p5), %s203_s25, 128  }
  0x63   : > { %468 = vsyncadd (%p292_p5), %s203_s25, 4294967168  ;;  %s17_s13 = sadd.s32 1, %s500_s13   ;;  %s679_s6 = smov %s476_s7 }
  0x64   : > { %p14_p8 = scmp.ge.s32.totalorder %s17_s13, 4   ;;  %s680_s7 = smov %s480_s8 }
  0x65   : > { %s681_s8 = smov %s572_s21  ;;  %s682_s9 = smov %s488_s10 }
  0x66   : > { %s654_s10 = smov 0   ;;  %s683_s11 = smov %s496_s12 }
  0x67   : > { %s684_s12 = smov %s686_s16  ;;  %16 = sbr.rel (!%p14_p8) target bundleno = 7 (0x7), region = 73 }
  0x6c   :  { %208 = vsyncpa [#allocation3], 1 }
  0x6d   :  { %210 = vsyncpa [#allocation3 + $0x1], 1 }
  0x6e   :  { %211 = vsyncpa [#allocation4], 1 }
  0x6f   :  { %213 = vsyncpa [#allocation4 + $0x1], 1 }

</bundles_post_ra>
